<compile_context>
chip_gen: v6e
topology: v6e:2x2x1
jax: 0.10.0
libtpu: 0.0.40
codegen_flags: <defaults>
</compile_context>

<pallas_src>
import jax
import jax.numpy as jnp
from jax import lax
from jax.experimental import pallas as pl
from jax.experimental.pallas import tpu as pltpu


def _round_up(x: int, m: int) -> int:
    return (x + m - 1) // m * m


def dqn_mlp_kernel(s_ref, a_ref, w1s_ref, w1a_ref, b1_ref, w2_ref, b2_ref,
                   w3_ref, b3_ref, o_ref):
    """One TILE_B-row batch tile of the fused 3-layer MLP."""
    cdt = w1s_ref.dtype  # matmul operand dtype (bf16 by default); accumulate in f32

    s = s_ref[...].astype(cdt)            # (TILE_B, obs)
    a = a_ref[...].astype(cdt)            # (TILE_B, act)

    # Layer 1: x @ W1 + b1 == state @ W1s + action @ W1a + b1 (concat eliminated).
    h1 = jnp.dot(s, w1s_ref[...], preferred_element_type=jnp.float32)
    h1 = h1 + jnp.dot(a, w1a_ref[...], preferred_element_type=jnp.float32)
    h1 = jnp.maximum(h1 + b1_ref[...], 0.0)           # (TILE_B, H), f32

    # Layer 2.
    h2 = jnp.dot(h1.astype(cdt), w2_ref[...], preferred_element_type=jnp.float32)
    h2 = jnp.maximum(h2 + b2_ref[...], 0.0)            # (TILE_B, H), f32

    # Layer 3 (out_features == 1), computed transposed so the result is (1, TILE_B)
    # with batch on the lane axis -> lane-dense, unmasked stores.
    q = lax.dot_general(w3_ref[...], h2.astype(cdt),
                        dimension_numbers=(((1,), (1,)), ((), ())),
                        preferred_element_type=jnp.float32)        # (1, TILE_B)
    o_ref[...] = (q + b3_ref[...]).astype(o_ref.dtype)


def dqn_forward(state, action, params, *, tile_b=1024, compute_dtype=jnp.bfloat16):
    """state: (B, obs_size), action: (B, act_dims). Returns (B, 1) float32 Q-values."""
    w1, b1, w2, b2, w3, b3 = params
    B, obs = state.shape
    act = action.shape[1]
    hidden = w1.shape[1]
    in_dim = obs + act
    assert w1.shape[0] == in_dim

    # ---- tiny one-time parameter prep (host-side, negligible HBM traffic) ----
    w1s = w1[:obs].astype(compute_dtype)                 # (obs, H)
    w1a = w1[obs:].astype(compute_dtype)                 # (act, H)
    w2c = w2.astype(compute_dtype)                       # (H, H)
    w3r = w3.reshape(1, hidden).astype(compute_dtype)    # (1, H) for the transposed dot
    b1f = b1.reshape(1, hidden).astype(jnp.float32)
    b2f = b2.reshape(1, hidden).astype(jnp.float32)
    b3f = b3.reshape(1, 1).astype(jnp.float32)

    state_f = state.astype(jnp.float32)                  # matches torch .float()
    action_f = action.astype(jnp.float32)

    # ---- batch tiling: TILE_B multiple of 128 (lane-dense output) and of 8 (sublanes) ----
    tile_b = max(128, min(int(tile_b), _round_up(B, 128)))
    tile_b = _round_up(tile_b, 128)
    b_pad = _round_up(B, tile_b)
    if b_pad != B:
        state_f = jnp.pad(state_f, ((0, b_pad - B), (0, 0)))
        action_f = jnp.pad(action_f, ((0, b_pad - B), (0, 0)))
    num_tiles = b_pad // tile_b

    cost = pl.CostEstimate(
        flops=2 * b_pad * (in_dim * hidden + hidden * hidden + hidden),
        transcendentals=0,
        bytes_accessed=(b_pad * in_dim * 4                                  # activations in
                        + b_pad * 4                                         # q out
                        + (in_dim * hidden + hidden * hidden + hidden) * 2  # bf16 weights
                        + (2 * hidden + 1) * 4),                            # f32 biases
    )

    const = lambda i: (0, 0)  # weights/biases stay VMEM-resident across grid steps

    out = pl.pallas_call(
        dqn_mlp_kernel,
        out_shape=jax.ShapeDtypeStruct((1, b_pad), jnp.float32),
        grid_spec=pl.GridSpec(
            grid=(num_tiles,),
            in_specs=[
                pl.BlockSpec((tile_b, obs), lambda i: (i, 0)),   # state tile (streams)
                pl.BlockSpec((tile_b, act), lambda i: (i, 0)),   # action tile (streams)
                pl.BlockSpec(w1s.shape, const),
                pl.BlockSpec(w1a.shape, const),
                pl.BlockSpec(b1f.shape, const),
                pl.BlockSpec(w2c.shape, const),
                pl.BlockSpec(b2f.shape, const),
                pl.BlockSpec(w3r.shape, const),
                pl.BlockSpec(b3f.shape, const),
            ],
            out_specs=pl.BlockSpec((1, tile_b), lambda i: (0, i)),  # lane-dense q row
        ),
        compiler_params=pltpu.CompilerParams(
            dimension_semantics=("parallel",),   # batch axis shardable across TCs (v7x)
        ),
        cost_estimate=cost,
    )(state_f, action_f, w1s, w1a, b1f, w2c, b2f, w3r, b3f)

    return out[0, :B].reshape(B, 1)


def init_dqn_params(key, hidden_size, obs_size, out_dims):
    """Deterministic init mimicking PyTorch Linear default (uniform +/- 1/sqrt(fan_in))."""
    in_dim = obs_size + out_dims
    ks = jax.random.split(key, 6)

    def lin(kw, kb, fan_in, fan_out):
        bound = 1.0 / jnp.sqrt(jnp.float32(fan_in))
        w = jax.random.uniform(kw, (fan_in, fan_out), jnp.float32, -bound, bound)
        b = jax.random.uniform(kb, (1, fan_out), jnp.float32, -bound, bound)
        return w, b

    w1, b1 = lin(ks[0], ks[1], in_dim, hidden_size)
    w2, b2 = lin(ks[2], ks[3], hidden_size, hidden_size)
    w3, b3 = lin(ks[4], ks[5], hidden_size, 1)
    return (w1, b1, w2, b2, w3, b3)


def dqn_reference(state, action, params, compute_dtype=jnp.bfloat16):
    """Pure-JAX reference using the same bf16-operand / f32-accumulate numerics."""
    w1, b1, w2, b2, w3, b3 = params
    x = jnp.concatenate([state, action], axis=1).astype(jnp.float32)
    cd = compute_dtype
    h1 = jnp.maximum(
        jnp.dot(x.astype(cd), w1.astype(cd), preferred_element_type=jnp.float32) + b1, 0.0)
    h2 = jnp.maximum(
        jnp.dot(h1.astype(cd), w2.astype(cd), preferred_element_type=jnp.float32) + b2, 0.0)
    return jnp.dot(h2.astype(cd), w3.astype(cd), preferred_element_type=jnp.float32) + b3


if __name__ == "__main__":
    # Small shapes consistent with the module's forward.
    batch, obs_size, out_dims, hidden_size = 8, 16, 16, 32

    key = jax.random.PRNGKey(0)
    k_state, k_action, k_params = jax.random.split(key, 3)
    state = jax.random.normal(k_state, (batch, obs_size), jnp.float32)
    action = jax.random.normal(k_action, (batch, out_dims), jnp.float32)
    params = init_dqn_params(k_params, hidden_size, obs_size, out_dims)

    out = jax.block_until_ready(dqn_forward(state, action, params))
    ref = dqn_reference(state, action, params)
    assert out.shape == (batch, 1), out.shape
    assert jnp.allclose(out, ref, atol=1e-2, rtol=1e-2), (out, ref)

    # Exercise the multi-tile (grid > 1) + batch-padding path as well.
    B2 = 300
    s2 = jax.random.normal(jax.random.PRNGKey(1), (B2, obs_size), jnp.float32)
    a2 = jax.random.normal(jax.random.PRNGKey(2), (B2, out_dims), jnp.float32)
    out2 = jax.block_until_ready(dqn_forward(s2, a2, params, tile_b=128))
    ref2 = dqn_reference(s2, a2, params)
    assert out2.shape == (B2, 1), out2.shape
    assert jnp.allclose(out2, ref2, atol=1e-2, rtol=1e-2)

    print("KERNEL_OK")
</pallas_src>

<mosaic_0001>
module attributes {stable_mosaic.version = 11 : i64} {
  func.func @dqn_mlp_kernel(%arg0: i32, %arg1: memref<128x16xf32, #tpu.memory_space<vmem>>, %arg2: memref<128x16xf32, #tpu.memory_space<vmem>>, %arg3: memref<16x32xbf16, #tpu.memory_space<vmem>>, %arg4: memref<16x32xbf16, #tpu.memory_space<vmem>>, %arg5: memref<1x32xf32, #tpu.memory_space<vmem>>, %arg6: memref<32x32xbf16, #tpu.memory_space<vmem>>, %arg7: memref<1x32xf32, #tpu.memory_space<vmem>>, %arg8: memref<1x32xbf16, #tpu.memory_space<vmem>>, %arg9: memref<1x1xf32, #tpu.memory_space<vmem>>, %arg10: memref<1x128xf32, #tpu.memory_space<vmem>>) attributes {dimension_semantics = [#tpu.dimension_semantics<parallel>], iteration_bounds = array<i64: 1>, scalar_prefetch = 0 : i64, scratch_operands = 0 : i64, tpu.core_type = #tpu.core_type<tc>, window_params = [{transform_indices = @transform_0, window_bounds = array<i64: 128, 16>}, {transform_indices = @transform_1, window_bounds = array<i64: 128, 16>}, {pipeline_mode = #tpu.pipeline_mode<synchronous>, transform_indices = @transform_2, window_bounds = array<i64: 16, 32>}, {pipeline_mode = #tpu.pipeline_mode<synchronous>, transform_indices = @transform_3, window_bounds = array<i64: 16, 32>}, {pipeline_mode = #tpu.pipeline_mode<synchronous>, transform_indices = @transform_4, window_bounds = array<i64: 1, 32>}, {pipeline_mode = #tpu.pipeline_mode<synchronous>, transform_indices = @transform_5, window_bounds = array<i64: 32, 32>}, {pipeline_mode = #tpu.pipeline_mode<synchronous>, transform_indices = @transform_6, window_bounds = array<i64: 1, 32>}, {pipeline_mode = #tpu.pipeline_mode<synchronous>, transform_indices = @transform_7, window_bounds = array<i64: 1, 32>}, {pipeline_mode = #tpu.pipeline_mode<synchronous>, transform_indices = @transform_8, window_bounds = array<i64: 1, 1>}, {transform_indices = @transform_9, window_bounds = array<i64: 1, 128>}]} {
    %c0 = arith.constant 0 : index
    %c0_0 = arith.constant 0 : index
    %0 = vector.load %arg1[%c0, %c0_0] : memref<128x16xf32, #tpu.memory_space<vmem>>, vector<128x16xf32>
    %1 = arith.truncf %0 : vector<128x16xf32> to vector<128x16xbf16>
    %c0_1 = arith.constant 0 : index
    %c0_2 = arith.constant 0 : index
    %2 = vector.load %arg2[%c0_1, %c0_2] : memref<128x16xf32, #tpu.memory_space<vmem>>, vector<128x16xf32>
    %3 = arith.truncf %2 : vector<128x16xf32> to vector<128x16xbf16>
    %c0_3 = arith.constant 0 : index
    %c0_4 = arith.constant 0 : index
    %4 = vector.load %arg3[%c0_3, %c0_4] : memref<16x32xbf16, #tpu.memory_space<vmem>>, vector<16x32xbf16>
    %cst = arith.constant dense<0.000000e+00> : vector<128x32xf32>
    %5 = tpu.matmul %1, %4, %cst {dimension_numbers = #tpu.dot_dimension_numbers<[1], [0], [0], [1], [0, 0, 1, 1], [], []>} : vector<128x16xbf16>, vector<16x32xbf16>, vector<128x32xf32> -> vector<128x32xf32>
    %c0_5 = arith.constant 0 : index
    %c0_6 = arith.constant 0 : index
    %6 = vector.load %arg4[%c0_5, %c0_6] : memref<16x32xbf16, #tpu.memory_space<vmem>>, vector<16x32xbf16>
    %cst_7 = arith.constant dense<0.000000e+00> : vector<128x32xf32>
    %7 = tpu.matmul %3, %6, %cst_7 {dimension_numbers = #tpu.dot_dimension_numbers<[1], [0], [0], [1], [0, 0, 1, 1], [], []>} : vector<128x16xbf16>, vector<16x32xbf16>, vector<128x32xf32> -> vector<128x32xf32>
    %8 = arith.addf %5, %7 : vector<128x32xf32>
    %c0_8 = arith.constant 0 : index
    %c0_9 = arith.constant 0 : index
    %9 = vector.load %arg5[%c0_8, %c0_9] : memref<1x32xf32, #tpu.memory_space<vmem>>, vector<1x32xf32>
    %10 = vector.broadcast %9 : vector<1x32xf32> to vector<128x32xf32>
    %11 = arith.addf %8, %10 : vector<128x32xf32>
    %cst_10 = arith.constant 0.000000e+00 : f32
    %12 = vector.broadcast %cst_10 : f32 to vector<128x32xf32>
    %13 = arith.maximumf %11, %12 : vector<128x32xf32>
    %14 = arith.truncf %13 : vector<128x32xf32> to vector<128x32xbf16>
    %c0_11 = arith.constant 0 : index
    %c0_12 = arith.constant 0 : index
    %15 = vector.load %arg6[%c0_11, %c0_12] : memref<32x32xbf16, #tpu.memory_space<vmem>>, vector<32x32xbf16>
    %cst_13 = arith.constant dense<0.000000e+00> : vector<128x32xf32>
    %16 = tpu.matmul %14, %15, %cst_13 {dimension_numbers = #tpu.dot_dimension_numbers<[1], [0], [0], [1], [0, 0, 1, 1], [], []>} : vector<128x32xbf16>, vector<32x32xbf16>, vector<128x32xf32> -> vector<128x32xf32>
    %c0_14 = arith.constant 0 : index
    %c0_15 = arith.constant 0 : index
    %17 = vector.load %arg7[%c0_14, %c0_15] : memref<1x32xf32, #tpu.memory_space<vmem>>, vector<1x32xf32>
    %18 = vector.broadcast %17 : vector<1x32xf32> to vector<128x32xf32>
    %19 = arith.addf %16, %18 : vector<128x32xf32>
    %cst_16 = arith.constant 0.000000e+00 : f32
    %20 = vector.broadcast %cst_16 : f32 to vector<128x32xf32>
    %21 = arith.maximumf %19, %20 : vector<128x32xf32>
    %c0_17 = arith.constant 0 : index
    %c0_18 = arith.constant 0 : index
    %22 = vector.load %arg8[%c0_17, %c0_18] : memref<1x32xbf16, #tpu.memory_space<vmem>>, vector<1x32xbf16>
    %23 = arith.truncf %21 : vector<128x32xf32> to vector<128x32xbf16>
    %cst_19 = arith.constant dense<0.000000e+00> : vector<1x128xf32>
    %24 = tpu.matmul %22, %23, %cst_19 {dimension_numbers = #tpu.dot_dimension_numbers<[1], [1], [0], [0], [0, 0, 1, 0], [], []>} : vector<1x32xbf16>, vector<128x32xbf16>, vector<1x128xf32> -> vector<1x128xf32>
    %c0_20 = arith.constant 0 : index
    %c0_21 = arith.constant 0 : index
    %25 = vector.load %arg9[%c0_20, %c0_21] : memref<1x1xf32, #tpu.memory_space<vmem>>, vector<1x1xf32>
    %26 = vector.broadcast %25 : vector<1x1xf32> to vector<1x128xf32>
    %27 = arith.addf %24, %26 : vector<1x128xf32>
    %c0_22 = arith.constant 0 : index
    %c0_23 = arith.constant 0 : index
    %28 = vector.load %arg10[%c0_22, %c0_23] : memref<1x128xf32, #tpu.memory_space<vmem>>, vector<1x128xf32>
    tpu.vector_store %arg10[%c0_22, %c0_23], %27 {strides = array<i32>} : memref<1x128xf32, #tpu.memory_space<vmem>>, vector<1x128xf32>,
    return
  }
  func.func @transform_0(%arg0: i32) -> (i32, i32) {
    %c0_i32 = arith.constant 0 : i32
    %c0_i32_0 = arith.constant 0 : i32
    return %arg0, %c0_i32 : i32, i32
  }
  func.func @transform_1(%arg0: i32) -> (i32, i32) {
    %c0_i32 = arith.constant 0 : i32
    %c0_i32_0 = arith.constant 0 : i32
    return %arg0, %c0_i32 : i32, i32
  }
  func.func @transform_2(%arg0: i32) -> (i32, i32) {
    %c0_i32 = arith.constant 0 : i32
    %c0_i32_0 = arith.constant 0 : i32
    %c0_i32_1 = arith.constant 0 : i32
    return %c0_i32, %c0_i32_0 : i32, i32
  }
  func.func @transform_3(%arg0: i32) -> (i32, i32) {
    %c0_i32 = arith.constant 0 : i32
    %c0_i32_0 = arith.constant 0 : i32
    %c0_i32_1 = arith.constant 0 : i32
    return %c0_i32, %c0_i32_0 : i32, i32
  }
  func.func @transform_4(%arg0: i32) -> (i32, i32) {
    %c0_i32 = arith.constant 0 : i32
    %c0_i32_0 = arith.constant 0 : i32
    %c0_i32_1 = arith.constant 0 : i32
    return %c0_i32, %c0_i32_0 : i32, i32
  }
  func.func @transform_5(%arg0: i32) -> (i32, i32) {
    %c0_i32 = arith.constant 0 : i32
    %c0_i32_0 = arith.constant 0 : i32
    %c0_i32_1 = arith.constant 0 : i32
    return %c0_i32, %c0_i32_0 : i32, i32
  }
  func.func @transform_6(%arg0: i32) -> (i32, i32) {
    %c0_i32 = arith.constant 0 : i32
    %c0_i32_0 = arith.constant 0 : i32
    %c0_i32_1 = arith.constant 0 : i32
    return %c0_i32, %c0_i32_0 : i32, i32
  }
  func.func @transform_7(%arg0: i32) -> (i32, i32) {
    %c0_i32 = arith.constant 0 : i32
    %c0_i32_0 = arith.constant 0 : i32
    %c0_i32_1 = arith.constant 0 : i32
    return %c0_i32, %c0_i32_0 : i32, i32
  }
  func.func @transform_8(%arg0: i32) -> (i32, i32) {
    %c0_i32 = arith.constant 0 : i32
    %c0_i32_0 = arith.constant 0 : i32
    %c0_i32_1 = arith.constant 0 : i32
    return %c0_i32, %c0_i32_0 : i32, i32
  }
  func.func @transform_9(%arg0: i32) -> (i32, i32) {
    %c0_i32 = arith.constant 0 : i32
    %c0_i32_0 = arith.constant 0 : i32
    return %c0_i32, %arg0 : i32, i32
  }
}

</mosaic_0001>

<bundles_post_ra>
// kernel: tpu_custom_call.1
= control target key start
LH: loop header
LB: loop body
LE: loop exit
PB: predicated region body
PF: predicated region fallthrough
CT: control target
= control target key end

     0   :  { %s1082_s0 = inlined_call_operand.vmem [shape: f32[128,16], index: 0, kind: input, shape index: {}]   ;;  %s1083_s1 = inlined_call_operand.vmem [shape: f32[128,16], index: 1, kind: input, shape index: {}]   ;;  %s1084_s2 = inlined_call_operand.vmem [shape: bf16[16,32], index: 2, kind: input, shape index: {}]   ;;  %s1085_s3 = inlined_call_operand.vmem [shape: bf16[16,32], index: 3, kind: input, shape index: {}]   ;;  %s1086_s4 = inlined_call_operand.vmem [shape: f32[1,32], index: 4, kind: input, shape index: {}]   ;;  %s1087_s5 = inlined_call_operand.vmem [shape: bf16[32,32], index: 5, kind: input, shape index: {}]   ;;  %s1088_s6 = inlined_call_operand.vmem [shape: f32[1,32], index: 6, kind: input, shape index: {}]   ;;  %s1089_s7 = inlined_call_operand.vmem [shape: bf16[1,32], index: 7, kind: input, shape index: {}]   ;;  %s1090_s8 = inlined_call_operand.<no memory space> [shape: f32[1,1], index: 8, kind: input, shape index: {}]   ;;  %s1091_s9 = inlined_call_operand.hbm [shape: f32[1,128], index: 9, kind: output, shape index: {}]  }
   0x1   :  { %v14_v0 = vstv %s1090_s8 }
   0x2   :  { %15 = vst [vmem:[#allocation2] sm:$0x1] %v14_v0 }
   0x3   :  { %v801_v1 = vld [vmem:[%s1085_s3] sm:$0xff]   ;;  %v61_v4 = vld [vmem:[%s1083_s1 + $0x8] sm:$0xff]  ;;  %vm94_vm0 = vcmask 130048   ;;  %v62_v8 = vld [vmem:[%s1083_s1 + $0x10] sm:$0xff] }
   0x4   :  { %v802_v2 = vld [vmem:[%s1084_s2] sm:$0xff]   ;;  %720 = vmatprep.subr.bf16.mxu0 %v801_v1  ;;  %v37_v7 = vld [vmem:[%s1082_s0 + $0x8] sm:$0xff]  ;;  %v63_v9 = vld [vmem:[%s1083_s1 + $0x18] sm:$0xff] }
   0x5   :  { %v60_v3 = vld [vmem:[%s1083_s1] sm:$0xff]  ;;  %738 = vmatprep.subr.bf16.mxu1 %v802_v2  ;;  %721 = vmatpush3.bf16.msra.mxu0 %v801_v1  ;;  %v77_v11 = vpack.c.bf16 %v63_v9, %v62_v8  ;;  %v38_v12 = vld [vmem:[%s1082_s0 + $0x10] sm:$0xff]  ;;  %v39_v13 = vld [vmem:[%s1082_s0 + $0x18] sm:$0xff] }
   0x6   :  { %v36_v5 = vld [vmem:[%s1082_s0] sm:$0xff]  ;;  %v76_v6 = vpack.c.bf16 %v61_v4, %v60_v3  ;;  %739 = vmatpush3.bf16.msra.mxu1 %v802_v2  ;;  %v53_v15 = vpack.c.bf16 %v39_v13, %v38_v12  ;;  %v65_v16 = vld [vmem:[%s1083_s1 + $0x28] sm:$0xff]  ;;  %v66_v21 = vld [vmem:[%s1083_s1 + $0x30] sm:$0xff] }
   0x7   :  { %v52_v10 = vpack.c.bf16 %v37_v7, %v36_v5  ;;  %v64_v14 = vld [vmem:[%s1083_s1 + $0x20] sm:$0xff]  ;;  %v41_v18 = vld [vmem:[%s1082_s0 + $0x28] sm:$0xff]  ;;  %v67_v22 = vld [vmem:[%s1083_s1 + $0x38] sm:$0xff] }
   0x8   :  { %722 = vmatprep.mubr.msk.bf16.mxu0 %vm94_vm0, %v76_v6  ;;  %v40_v17 = vld [vmem:[%s1082_s0 + $0x20] sm:$0xff]  ;;  %v78_v19 = vpack.c.bf16 %v65_v16, %v64_v14  ;;  %v42_v23 = vld [vmem:[%s1082_s0 + $0x30] sm:$0xff]  ;;  %v43_v24 = vld [vmem:[%s1082_s0 + $0x38] sm:$0xff]  ;;  %v79_v29 = vpack.c.bf16 %v67_v22, %v66_v21 }
   0x9   :  { %740 = vmatprep.mubr.msk.bf16.mxu1 %vm94_vm0, %v52_v10  ;;  %723 = vmatmul.mubr.msk.bf16.vlgmr.msra.gmra.mxu0 %vm94_vm0, %v77_v11  ;;  %v54_v20 = vpack.c.bf16 %v41_v18, %v40_v17  ;;  %v68_v25 = vld [vmem:[%s1083_s1 + $0x40] sm:$0xff]  ;;  %v69_v26 = vld [vmem:[%s1083_s1 + $0x48] sm:$0xff]  ;;  %v55_v30 = vpack.c.bf16 %v43_v24, %v42_v23 }
   0xa   :  { %741 = vmatmul.mubr.msk.bf16.vlgmr.msra.gmra.mxu1 %vm94_vm0, %v53_v15  ;;  %726 = vmatprep.mubr.msk.bf16.mxu0 %vm94_vm0, %v78_v19  ;;  %v44_v27 = vld [vmem:[%s1082_s0 + $0x40] sm:$0xff]  ;;  %v45_v28 = vld [vmem:[%s1082_s0 + $0x48] sm:$0xff]  ;;  %v80_v31 = vpack.c.bf16 %v69_v26, %v68_v25 }
   0xb   :  { %744 = vmatprep.mubr.msk.bf16.mxu1 %vm94_vm0, %v54_v20  ;;  %v56_v32 = vpack.c.bf16 %v45_v28, %v44_v27  ;;  %v803_v33 = vld [vmem:[%s1087_s5 + $0x8] sm:$0xff]   ;;  %v804_v34 = vld [vmem:[%s1087_s5] sm:$0xff]  }
  0x11   :  { %727 = vmatmul.mubr.msk.bf16.gmra.mxu0 %vm94_vm0, %v79_v29 }
  0x12   :  { %16 = vsyncpa [#allocation4], 0  ;;  %745 = vmatmul.mubr.msk.bf16.gmra.mxu1 %vm94_vm0, %v55_v30  ;;  %730 = vmatprep.mubr.msk.bf16.mxu0 %vm94_vm0, %v80_v31  ;;  %v70_v35 = vld [vmem:[%s1083_s1 + $0x50] sm:$0xff]  ;;  %v71_v36 = vld [vmem:[%s1083_s1 + $0x58] sm:$0xff]  ;;  %vm413_vm1 = vcmask 261120   ;;  %vm828_vm2 = vmmov 0  }
  0x13   :  { %v46_v37 = vld [vmem:[%s1082_s0 + $0x50] sm:$0xff]  ;;  %748 = vmatprep.mubr.msk.bf16.mxu1 %vm94_vm0, %v56_v32  ;;  %v47_v38 = vld [vmem:[%s1082_s0 + $0x58] sm:$0xff]  ;;  %v72_v39 = vld [vmem:[%s1083_s1 + $0x60] sm:$0xff]  ;;  %756 = vmatprep.subr.bf16.mxu0 %v803_v33  ;;  %v81_v43 = vpack.c.bf16 %v71_v36, %v70_v35  ;;  %s830_s12 = smov [#allocation3]  }
  0x14   :  { %v73_v40 = vld [vmem:[%s1083_s1 + $0x68] sm:$0xff]  ;;  %v48_v41 = vld [vmem:[%s1082_s0 + $0x60] sm:$0xff]  ;;  %757 = vmatpush3.bf16.msra.mxu0 %v803_v33  ;;  %v57_v44 = vpack.c.bf16 %v47_v38, %v46_v37  ;;  %v74_v47 = vld [vmem:[%s1083_s1 + $0x70] sm:$0xff]  ;;  %s644_s13 = sshll.u32 %s830_s12, 4  ;;  %s645_s13 = int_to_ptr.vmem [resolvable:$true] %s644_s13 }
  0x15   :  { %v49_v42 = vld [vmem:[%s1082_s0 + $0x68] sm:$0xff]  ;;  %758 = vmatprep.subr.bf16.mxu0 %v804_v34  ;;  %v82_v45 = vpack.c.bf16 %v73_v40, %v72_v39  ;;  %v75_v48 = vld [vmem:[%s1083_s1 + $0x78] sm:$0xff]  ;;  %v50_v49 = vld [vmem:[%s1082_s0 + $0x70] sm:$0xff]  ;;  %s805_s14 = scalar_lea.vmem %s645_s13, 16  ;;  %s809_s15 = scalar_lea.vmem %s645_s13, 32 }
  0x16   :  { %v58_v46 = vpack.c.bf16 %v49_v42, %v48_v41  ;;  %v51_v50 = vld [vmem:[%s1082_s0 + $0x78] sm:$0xff]  ;;  %v83_v51 = vpack.c.bf16 %v75_v48, %v74_v47  ;;  %v1011_v61 = vld [vmem:[%s1086_s4] ss:$0 sm:$0xff]  ;;  %p806_p0 = scmp.ne.s32.totalorder %s645_s13, %s805_s14  ;;  %p810_p1 = scmp.lt.s32.totalorder %s645_s13, %s645_s13 }
  0x17   :  { %v59_v52 = vpack.c.bf16 %v51_v50, %v50_v49  ;;  %p811_p2 = scmp.lt.s32.totalorder %s809_s15, %s805_s14 }
  0x18   :  { %759 = vmatpush3.bf16.msra.mxu0 %v804_v34 }
  0x19   :  { %731 = vmatmul.mubr.msk.bf16.gmra.mxu0 %vm94_vm0, %v81_v43  ;;  %p812_p3 = por %p811_p2, %p810_p1 }
  0x1a   :  { %749 = vmatmul.mubr.msk.bf16.gmra.mxu1 %vm94_vm0, %v57_v44  ;;  %734 = vmatprep.mubr.msk.bf16.mxu0 %vm94_vm0, %v82_v45 }
  0x1b   :  { %752 = vmatprep.mubr.msk.bf16.mxu1 %vm94_vm0, %v58_v46  ;;  %p813_p4 = pnand %p812_p3, %p806_p0 }
  0x21   :  { %735 = vmatmul.mubr.msk.bf16.gmra.mxu0 %vm94_vm0, %v83_v51 }
  0x22   :  { %753 = vmatmul.mubr.msk.bf16.gmra.mxu1 %vm94_vm0, %v59_v52 }
  0xc9   :  { %v724_v53 = vpop.f32.mrf.mxu0 }
  0xca   :  { %v742_v54 = vpop.f32.mrf.mxu1 }
  0xcb   :  { %v153_v55 = vpop.f32.mrf.mxu0  ;;  %v289_v59 = vadd.f32 %v742_v54, %v724_v53 }
  0xcc   :  { %v280_v56 = vpop.f32.mrf.mxu1 }
  0xcd   :  { %v281_v57 = vadd.f32 %v280_v56, %v153_v55  ;;  %v725_v58 = vpop.f32.mrf.mxu0  ;;  %v352_v5 = vadd.f32 %v1011_v61, %v289_v59 }
  0xce   :  { %v743_v60 = vpop.f32.mrf.mxu1 }
  0xcf   :  { %v292_v62 = vadd.f32 %v743_v60, %v725_v58  ;;  %v156_v63 = vpop.f32.mrf.mxu0  ;;  %v350_v1 = vadd.f32 %v1011_v61, %v281_v57  ;;  %v368_v15 = vmax.f32 %v352_v5, 0.0 }
  0xd0   :  { %v283_v0 = vpop.f32.mrf.mxu1 }
  0xd1   :  { %v353_v2 = vadd.f32 %v1011_v61, %v292_v62  ;;  %v284_v3 = vadd.f32 %v283_v0, %v156_v63  ;;  %v728_v4 = vpop.f32.mrf.mxu0  ;;  %v366_v11 = vmax.f32 %v350_v1, 0.0 }
  0xd2   :  { %v746_v6 = vpop.f32.mrf.mxu1 }
  0xd3   :  { %v351_v7 = vadd.f32 %v1011_v61, %v284_v3  ;;  %v169_v8 = vpop.f32.mrf.mxu0  ;;  %v369_v9 = vmax.f32 %v353_v2, 0.0  ;;  %v305_v16 = vadd.f32 %v746_v6, %v728_v4 }
  0xd4   :  { %v296_v10 = vpop.f32.mrf.mxu1 }
  0xd5   :  { %v367_v12 = vmax.f32 %v351_v7, 0.0  ;;  %v297_v13 = vadd.f32 %v296_v10, %v169_v8  ;;  %v729_v14 = vpop.f32.mrf.mxu0  ;;  %v383_v21 = vpack.c.bf16 %v369_v9, %v368_v15  ;;  %v356_v27 = vadd.f32 %v1011_v61, %v305_v16  ;;  %v560_v16 = vld [vmem:[#allocation2] sm:$0x1] }
  0xd6   :  { %v747_v17 = vpop.f32.mrf.mxu1  ;;  %v827_v15 = vmov 0.0  }
  0xd7   :  { %v382_v18 = vpack.c.bf16 %v367_v12, %v366_v11  ;;  %v308_v19 = vadd.f32 %v747_v17, %v729_v14  ;;  %v172_v20 = vpop.f32.mrf.mxu0  ;;  %v354_v23 = vadd.f32 %v1011_v61, %v297_v13  ;;  %v372_v37 = vmax.f32 %v356_v27, 0.0  ;;  %776 = vmatprep.subr.bf16.mxu1 %v827_v15  ;;  %792 = vmatprep.mubr.msk.bf16.mxu1 %vm828_vm2, %v827_v15 }
  0xd8   :  { %v299_v22 = vpop.f32.mrf.mxu1  ;;  %v829_v17 = vmov 0  }
  0xd9   :  { %v357_v24 = vadd.f32 %v1011_v61, %v308_v19  ;;  %v300_v25 = vadd.f32 %v299_v22, %v172_v20  ;;  %760 = vmatprep.mubr.msk.bf16.mxu0 %vm413_vm1, %v382_v18  ;;  %v732_v26 = vpop.f32.mrf.mxu0  ;;  %v370_v33 = vmax.f32 %v354_v23, 0.0  ;;  %800 = vset.pattern.permute.xlu0 %v829_v17  ;;  %v1042_v18 = vld [vmem:[%s1088_s6] ss:$0 sm:$0xff] }
  0xda   :  { %v750_v28 = vpop.f32.mrf.mxu1  ;;  %761 = vmatmul.mubr.msk.bf16.vlgmr.msra.gmra.mxu0 %vm413_vm1, %v383_v21  ;;  %563 = vperm.xlu0 %800, %v560_v16  }
  0xdb   :  { %v355_v29 = vadd.f32 %v1011_v61, %v300_v25  ;;  %v185_v30 = vpop.f32.mrf.mxu0  ;;  %v373_v31 = vmax.f32 %v357_v24, 0.0  ;;  %v321_v38 = vadd.f32 %v750_v28, %v732_v26 }
  0xdc   :  { %v312_v32 = vpop.f32.mrf.mxu1 }
  0xdd   :  { %v371_v34 = vmax.f32 %v355_v29, 0.0  ;;  %v313_v35 = vadd.f32 %v312_v32, %v185_v30  ;;  %v733_v36 = vpop.f32.mrf.mxu0  ;;  %v385_v43 = vpack.c.bf16 %v373_v31, %v372_v37  ;;  %v360_v49 = vadd.f32 %v1011_v61, %v321_v38 }
  0xde   :  { %v751_v39 = vpop.f32.mrf.mxu1 }
  0xdf   :  { %v384_v40 = vpack.c.bf16 %v371_v34, %v370_v33  ;;  %v324_v41 = vadd.f32 %v751_v39, %v733_v36  ;;  %v188_v42 = vpop.f32.mrf.mxu0  ;;  %v358_v45 = vadd.f32 %v1011_v61, %v313_v35  ;;  %v376_v59 = vmax.f32 %v360_v49, 0.0 }
  0xe0   :  { %v315_v44 = vpop.f32.mrf.mxu1 }
  0xe1   :  { %v361_v46 = vadd.f32 %v1011_v61, %v324_v41  ;;  %v316_v47 = vadd.f32 %v315_v44, %v188_v42  ;;  %764 = vmatprep.mubr.msk.bf16.mxu0 %vm413_vm1, %v384_v40  ;;  %v736_v48 = vpop.f32.mrf.mxu0  ;;  %v374_v55 = vmax.f32 %v358_v45, 0.0 }
  0xe2   :  { %v754_v50 = vpop.f32.mrf.mxu1  ;;  %765 = vmatmul.mubr.msk.bf16.gmra.mxu0 %vm413_vm1, %v385_v43 }
  0xe3   :  { %v359_v51 = vadd.f32 %v1011_v61, %v316_v47  ;;  %v201_v52 = vpop.f32.mrf.mxu0  ;;  %v377_v53 = vmax.f32 %v361_v46, 0.0  ;;  %v337_v60 = vadd.f32 %v754_v50, %v736_v48 }
  0xe4   :  { %v328_v54 = vpop.f32.mrf.mxu1 }
  0xe5   :  { %v375_v56 = vmax.f32 %v359_v51, 0.0  ;;  %v329_v57 = vadd.f32 %v328_v54, %v201_v52  ;;  %v737_v58 = vpop.f32.mrf.mxu0  ;;  %v387_v2 = vpack.c.bf16 %v377_v53, %v376_v59  ;;  %v364_v7 = vadd.f32 %v1011_v61, %v337_v60 }
  0xe6   :  { %v755_v62 = vpop.f32.mrf.mxu1 }
  0xe7   :  { %v386_v63 = vpack.c.bf16 %v375_v56, %v374_v55  ;;  %v340_v0 = vadd.f32 %v755_v62, %v737_v58  ;;  %v204_v1 = vpop.f32.mrf.mxu0  ;;  %v362_v4 = vadd.f32 %v1011_v61, %v329_v57  ;;  %v380_v12 = vmax.f32 %v364_v7, 0.0 }
  0xe8   :  { %v331_v3 = vpop.f32.mrf.mxu1 }
  0xe9   :  { %v365_v5 = vadd.f32 %v1011_v61, %v340_v0  ;;  %v332_v6 = vadd.f32 %v331_v3, %v204_v1  ;;  %768 = vmatprep.mubr.msk.bf16.mxu0 %vm413_vm1, %v386_v63  ;;  %v378_v10 = vmax.f32 %v362_v4, 0.0 }
  0xea   :  { %769 = vmatmul.mubr.msk.bf16.gmra.mxu0 %vm413_vm1, %v387_v2 }
  0xeb   :  { %v363_v8 = vadd.f32 %v1011_v61, %v332_v6  ;;  %v381_v9 = vmax.f32 %v365_v5, 0.0 }
  0xed   :  { %v379_v11 = vmax.f32 %v363_v8, 0.0  ;;  %v389_v14 = vpack.c.bf16 %v381_v9, %v380_v12 }
  0xef   :  { %v388_v13 = vpack.c.bf16 %v379_v11, %v378_v10 }
  0xf1   :  { %772 = vmatprep.mubr.msk.bf16.mxu0 %vm413_vm1, %v388_v13 }
  0xf2   :  { %773 = vmatmul.mubr.msk.bf16.gmra.mxu0 %vm413_vm1, %v389_v14 }
 0x19a   :  { %v762_v61 = vpop.f32.mrf.mxu0 }
 0x19b   :  { %v481_v20 = vadd.f32 %v762_v61, %v1042_v18 }
 0x19c   :  { %v472_v19 = vpop.f32.mrf.mxu0 }
 0x19d   :  { %v473_v22 = vadd.f32 %v1042_v18, %v472_v19  ;;  %v537_v25 = vmax.f32 %v481_v20, 0.0  ;;  %v551_v19 = vld [vmem:[%s1089_s7] sm:$0x1]  ;;  %v566_v20 = vlaneseq }
 0x19e   :  { %v763_v21 = vpop.f32.mrf.mxu0 }
 0x19f   :  { %v484_v23 = vadd.f32 %v763_v21, %v1042_v18  ;;  %v535_v29 = vmax.f32 %v473_v22, 0.0  ;;  %v567_v21 = vshrl.u32 %v566_v20, 7 }
 0x1a0   :  { %v475_v24 = vpop.f32.mrf.mxu0 }
 0x1a1   :  { %v538_v26 = vmax.f32 %v484_v23, 0.0  ;;  %v476_v27 = vadd.f32 %v1042_v18, %v475_v24  ;;  %v568_v22 = vsub.s32 0, %v567_v21  ;;  %v564_v23 = vpop.permute.xlu0 %563 }
 0x1a2   :  { %v766_v28 = vpop.f32.mrf.mxu0 }
 0x1a3   :  { %v553_v30 = vpack.c.bf16 %v538_v26, %v537_v25  ;;  %v536_v31 = vmax.f32 %v476_v27, 0.0  ;;  %v497_v5 = vadd.f32 %v766_v28, %v1042_v18  ;;  %v569_v24 = vrot.slane %v564_v23, %v568_v22 }
 0x1a4   :  { %v488_v32 = vpop.f32.mrf.mxu0 }
 0x1a5   :  { %v552_v33 = vpack.c.bf16 %v536_v31, %v535_v29  ;;  %v541_v8 = vmax.f32 %v497_v5, 0.0  ;;  %v489_v11 = vadd.f32 %v1042_v18, %v488_v32  ;;  %v577_v61 = vsel %vm413_vm1, %v553_v30, 0 }
 0x1a6   :  { %v767_v34 = vpop.f32.mrf.mxu0 }
 0x1a7   :  { %v500_v3 = vadd.f32 %v767_v34, %v1042_v18  ;;  %v539_v14 = vmax.f32 %v489_v11, 0.0 }
 0x1a8   :  { %v491_v35 = vpop.f32.mrf.mxu0 }
 0x1a9   :  { %v542_v6 = vmax.f32 %v500_v3, 0.0  ;;  %v492_v10 = vadd.f32 %v1042_v18, %v491_v35 }
 0x1aa   :  { %v770_v36 = vpop.f32.mrf.mxu0 }
 0x1ab   :  { %v513_v56 = vadd.f32 %v770_v36, %v1042_v18  ;;  %v555_v9 = vpack.c.bf16 %v542_v6, %v541_v8  ;;  %v540_v12 = vmax.f32 %v492_v10, 0.0 }
 0x1ac   :  { %v504_v37 = vpop.f32.mrf.mxu0 }
 0x1ad   :  { %v545_v59 = vmax.f32 %v513_v56, 0.0  ;;  %v505_v63 = vadd.f32 %v1042_v18, %v504_v37  ;;  %v583_v13 = vsel %vm413_vm1, %v555_v9, 0  ;;  %v554_v16 = vpack.c.bf16 %v540_v12, %v539_v14 }
 0x1ae   :  { %v771_v38 = vpop.f32.mrf.mxu0 }
 0x1af   :  { %v516_v54 = vadd.f32 %v771_v38, %v1042_v18  ;;  %v543_v2 = vmax.f32 %v505_v63, 0.0  ;;  %v580_v17 = vsel %vm413_vm1, %v554_v16, 0 }
 0x1b0   :  { %v507_v39 = vpop.f32.mrf.mxu0 }
 0x1b1   :  { %v546_v57 = vmax.f32 %v516_v54, 0.0  ;;  %v508_v62 = vadd.f32 %v1042_v18, %v507_v39 }
 0x1b2   :  { %v774_v40 = vpop.f32.mrf.mxu0 }
 0x1b3   :  { %v529_v42 = vadd.f32 %v774_v40, %v1042_v18  ;;  %v557_v60 = vpack.c.bf16 %v546_v57, %v545_v59  ;;  %v544_v0 = vmax.f32 %v508_v62, 0.0 }
 0x1b4   :  { %v520_v41 = vpop.f32.mrf.mxu0 }
 0x1b5   :  { %v549_v46 = vmax.f32 %v529_v42, 0.0  ;;  %v521_v49 = vadd.f32 %v1042_v18, %v520_v41  ;;  %v589_v1 = vsel %vm413_vm1, %v557_v60, 0  ;;  %v556_v4 = vpack.c.bf16 %v544_v0, %v543_v2 }
 0x1b6   :  { %v775_v43 = vpop.f32.mrf.mxu0 }
 0x1b7   :  { %v532_v44 = vadd.f32 %v775_v43, %v1042_v18  ;;  %v547_v53 = vmax.f32 %v521_v49, 0.0  ;;  %v586_v7 = vsel %vm413_vm1, %v556_v4, 0 }
 0x1b8   :  { %v523_v45 = vpop.f32.mrf.mxu0 }
 0x1b9   :  { %v550_v47 = vmax.f32 %v532_v44, 0.0  ;;  %v524_v48 = vadd.f32 %v1042_v18, %v523_v45  ;;  %v574_v18 = vsel %vm413_vm1, %v552_v33, 0 }
 0x1bb   :  { %v559_v50 = vpack.c.bf16 %v550_v47, %v549_v46  ;;  %v548_v51 = vmax.f32 %v524_v48, 0.0 }
 0x1bd   :  { %v595_v52 = vsel %vm413_vm1, %v559_v50, 0  ;;  %v558_v55 = vpack.c.bf16 %v548_v51, %v547_v53 }
 0x1be   :  { %777 = vmatpush3.bf16.xpose.msra.mxu1 %v595_v52 }
 0x1bf   :  { %778 = vmatprep.subr.bf16.mxu1 %v827_v15  ;;  %v592_v58 = vsel %vm413_vm1, %v558_v55, 0 }
 0x1c6   :  { %779 = vmatpush3.bf16.xpose.msra.mxu1 %v592_v58 }
 0x1c7   :  { %780 = vmatprep.subr.bf16.mxu1 %v827_v15 }
 0x1ce   :  { %781 = vmatpush3.bf16.xpose.msra.mxu1 %v589_v1 }
 0x1cf   :  { %782 = vmatprep.subr.bf16.mxu1 %v827_v15 }
 0x1d6   :  { %783 = vmatpush3.bf16.xpose.msra.mxu1 %v586_v7 }
 0x1d7   :  { %784 = vmatprep.subr.bf16.mxu1 %v827_v15 }
 0x1de   :  { %785 = vmatpush3.bf16.xpose.msra.mxu1 %v583_v13 }
 0x1df   :  { %786 = vmatprep.subr.bf16.mxu1 %v827_v15 }
 0x1e6   :  { %787 = vmatpush3.bf16.xpose.msra.mxu1 %v580_v17 }
 0x1e7   :  { %788 = vmatprep.subr.bf16.mxu1 %v827_v15 }
 0x1ee   :  { %789 = vmatpush3.bf16.xpose.msra.mxu1 %v577_v61 }
 0x1ef   :  { %790 = vmatprep.subr.bf16.mxu1 %v827_v15 }
 0x1f6   :  { %791 = vmatpush3.bf16.xpose.msra.mxu1 %v574_v18 }
 0x1fd   :  { %793 = vmatmul.mubr.msk.bf16.vlgmr.msra.gmra.mxu1 %vm413_vm1, %v551_v19 }
 0x2bd   :  { %v631_v25 = vpop.f32.mrf.mxu1 }
 0x2be   :  { %v632_v26 = vadd.f32 %v631_v25, %v569_v24 }
 0x2bf   :  { %v794_v15 = vpop.f32.mrf.mxu1 }
 0x2c0   :  { %637 = vst [vmem:[#allocation3] sm:$0x1] %v632_v26 }
 0x2c1   :  { %v634_v27 = vpop.f32.mrf.mxu1 }
 0x2c2   :  { %816 = shalt.err (!%p813_p4)
}
 0x2c3   :  { %647 = dma.vmem_to_hbm [thread:$0]  %s645_s13, 16, %s1091_s9, [#allocation4]   ;;  %v795_v28 = vpop.f32.mrf.mxu1 }
 0x2c4   :  { %825 = dma.done.wait [#allocation4], 16  }
 0x2c5   :  { %826 = vsyncadd [#allocation4], 4294967280 }
 0x2c6   :  { %651 = vsyncpa [#allocation4], 1 }

</bundles_post_ra>
